<compile_context>
chip_gen: v5e
topology: v5e:2x2
jax: 0.10.0
libtpu: 0.0.40
codegen_flags: <defaults>
</compile_context>

<pallas_src>
import functools

import jax
import jax.numpy as jnp
from jax import lax
from jax.experimental import pallas as pl
from jax.experimental.pallas import tpu as pltpu

_EPS = 1e-12


def _round_up(a, m):
    return (a + m - 1) // m * m


# ---------------------------------------------------------------------------
# Kernels
# ---------------------------------------------------------------------------
def _encode_queries_kernel(x_ref, w_ref, b_ref, q_ref):
    """One-shot: project queries and L2-normalize them (tiny [B, D] compute)."""
    q = jnp.dot(x_ref[...], w_ref[...],
                preferred_element_type=jnp.float32) + b_ref[...]
    q = q * lax.rsqrt(jnp.sum(q * q, axis=-1, keepdims=True) + _EPS)
    q_ref[...] = q.astype(q_ref.dtype)


def _score_topk_kernel(q_ref, doc_ref, scores_ref, ids_ref, *,
                       tile_n, topk, n_docs):
    """One grid step: score all queries against one tile of pre-normalized docs
    and reduce it to the per-tile top-k (scores + global doc ids).

    q_ref:      [B, D]            (constant across the grid)
    doc_ref:    [tile_n, D]       (pre-normalized doc tile streamed from HBM)
    scores_ref: [1, B, topk]      (per-tile top-k scores)
    ids_ref:    [1, B, topk]      (per-tile top-k global doc ids)
    """
    j = pl.program_id(0)
    # Single MXU matmul; contract the last dim of both operands -> no transpose.
    s = lax.dot_general(
        q_ref[...], doc_ref[...],
        dimension_numbers=(((1,), (1,)), ((), ())),
        preferred_element_type=jnp.float32)                 # [B, tile_n]

    col = lax.broadcasted_iota(jnp.int32, s.shape, 1)       # local column idx
    gid = col + j * tile_n                                   # global doc id
    neg_inf = jnp.float32(-jnp.inf)
    # Mask padded doc rows so they can never reach the top-k.
    s = jnp.where(gid < n_docs, s, neg_inf)

    # Iterative top-k extraction (topk is small & static; unrolled). All VPU/XLU
    # work — hides under the doc-stream DMA of the next tile.
    vals, ids = [], []
    for _ in range(topk):
        m = jnp.max(s, axis=-1, keepdims=True)                        # [B, 1]
        is_max = s == m
        amax = jnp.min(jnp.where(is_max, col, tile_n),
                       axis=-1, keepdims=True)                        # first hit
        vals.append(m)
        ids.append(amax + j * tile_n)
        s = jnp.where(col == amax, neg_inf, s)

    scores_ref[0] = jnp.concatenate(vals, axis=-1)
    ids_ref[0] = jnp.concatenate(ids, axis=-1).astype(jnp.int32)


# ---------------------------------------------------------------------------
# Wrappers
# ---------------------------------------------------------------------------
def prepare_doc_store(doc_emb, dtype=jnp.bfloat16):
    """L2-normalize the document embeddings once at store-build time.

    bf16 (default) halves HBM traffic in the bandwidth-bound scoring loop;
    pass dtype=jnp.float32 for an exact store."""
    d = doc_emb.astype(jnp.float32)
    d = d * lax.rsqrt(jnp.sum(d * d, axis=-1, keepdims=True) + _EPS)
    return d.astype(dtype)


@functools.partial(jax.jit, static_argnames=("topk", "tile_n"))
def retrieve_topk(x, w, b, doc_norm, *, topk=10, tile_n=4096):
    """Pallas retrieval hot path: encode queries, stream the pre-normalized doc
    store in big tiles, keep a per-tile top-k, then merge.  Returns
    (topk_scores [B, topk], topk_doc_ids [B, topk])."""
    B, H_in = x.shape
    H_in2, D = w.shape
    assert H_in == H_in2
    N_docs, D2 = doc_norm.shape
    assert D == D2

    # Sublane-aligned output: pad query batch to a multiple of 8.
    B_pad = max(8, _round_up(B, 8))
    if B_pad != B:
        x = jnp.pad(x, ((0, B_pad - B), (0, 0)))

    # Large doc tiles (>= ~1 MiB/step) keep the streaming loop bandwidth-bound.
    tile_n = max(128, min(int(tile_n), _round_up(N_docs, 128)))
    tile_n = _round_up(tile_n, 128)
    assert topk <= tile_n
    n_pad = _round_up(N_docs, tile_n)
    num_tiles = n_pad // tile_n
    if n_pad != N_docs:
        doc_norm = jnp.pad(doc_norm, ((0, n_pad - N_docs), (0, 0)))

    # (1) Encode queries (tiny one-shot; output written in the doc-store dtype).
    q = pl.pallas_call(
        _encode_queries_kernel,
        out_shape=jax.ShapeDtypeStruct((B_pad, D), doc_norm.dtype),
    )(x, w, b)

    # (2) Stream the doc store, reducing each tile to its top-k inside the kernel.
    kernel = functools.partial(_score_topk_kernel,
                               tile_n=tile_n, topk=topk, n_docs=N_docs)
    tile_scores, tile_ids = pl.pallas_call(
        kernel,
        out_shape=(
            jax.ShapeDtypeStruct((num_tiles, B_pad, topk), jnp.float32),
            jax.ShapeDtypeStruct((num_tiles, B_pad, topk), jnp.int32),
        ),
        grid_spec=pltpu.PrefetchScalarGridSpec(
            num_scalar_prefetch=0,
            grid=(num_tiles,),
            in_specs=[
                # normalized queries: constant block, resident across the grid
                pl.BlockSpec((B_pad, D), lambda j: (0, 0)),
                # doc tile: streamed from HBM (default double-buffering)
                pl.BlockSpec((tile_n, D), lambda j: (j, 0)),
            ],
            out_specs=(
                pl.BlockSpec((1, B_pad, topk), lambda j: (j, 0, 0)),
                pl.BlockSpec((1, B_pad, topk), lambda j: (j, 0, 0)),
            ),
        ),
        compiler_params=pltpu.CompilerParams(
            # stateless doc axis -> shardable across TensorCores (v7x)
            dimension_semantics=("parallel",),
        ),
    )(q, doc_norm)

    # (3) Tiny final merge over num_tiles*topk candidates per query.
    cand_scores = jnp.transpose(tile_scores, (1, 0, 2)).reshape(
        B_pad, num_tiles * topk)
    cand_ids = jnp.transpose(tile_ids, (1, 0, 2)).reshape(
        B_pad, num_tiles * topk)
    top_scores, pos = lax.top_k(cand_scores, topk)
    top_ids = jnp.take_along_axis(cand_ids, pos, axis=-1)
    return top_scores[:B], top_ids[:B]


def _reference(x, w, b, doc_emb, topk):
    q = x.astype(jnp.float32) @ w.astype(jnp.float32) + b.astype(jnp.float32)
    q = q * lax.rsqrt(jnp.sum(q * q, axis=-1, keepdims=True))
    d = doc_emb.astype(jnp.float32)
    d = d * lax.rsqrt(jnp.sum(d * d, axis=-1, keepdims=True))
    scores = q @ d.T
    return lax.top_k(scores, topk)


if __name__ == "__main__":
    key = jax.random.PRNGKey(0)
    k_x, k_w, k_b, k_docs = jax.random.split(key, 4)

    # Small shapes consistent with the pipeline: a batch of queries, a linear
    # embedding model, and a (non-tile-multiple) document-embedding collection.
    B, H_in, D, N_DOCS, TOPK = 8, 128, 128, 2000, 10

    x = jax.random.normal(k_x, (B, H_in), dtype=jnp.float32)          # query feats
    w = jax.random.normal(k_w, (H_in, D), dtype=jnp.float32) * 0.05   # proj weight
    b = jax.random.normal(k_b, (1, D), dtype=jnp.float32) * 0.01
    doc_emb = jax.random.normal(k_docs, (N_DOCS, D), dtype=jnp.float32)

    ref_scores, ref_ids = _reference(x, w, b, doc_emb, TOPK)

    # --- exact (f32 doc store), multi-tile path with a padded/masked last tile
    docs_f32 = prepare_doc_store(doc_emb, dtype=jnp.float32)
    s_a, i_a = retrieve_topk(x, w, b, docs_f32, topk=TOPK, tile_n=512)
    jax.block_until_ready((s_a, i_a))
    assert s_a.shape == (B, TOPK) and i_a.shape == (B, TOPK)
    assert jnp.allclose(s_a, ref_scores, atol=1e-4, rtol=1e-4)
    assert jnp.array_equal(i_a, ref_ids)

    # --- exact (f32 doc store), default big-tile path (single tile here)
    s_b, i_b = retrieve_topk(x, w, b, docs_f32, topk=TOPK)
    jax.block_until_ready((s_b, i_b))
    assert jnp.allclose(s_b, ref_scores, atol=1e-4, rtol=1e-4)
    assert jnp.array_equal(i_b, ref_ids)

    # --- bf16 streaming store (performance default): scores within bf16
    # tolerance; near-tie id reordering vs the f32 reference is expected.
    docs_bf16 = prepare_doc_store(doc_emb, dtype=jnp.bfloat16)
    s_c, i_c = retrieve_topk(x, w, b, docs_bf16, topk=TOPK, tile_n=512)
    jax.block_until_ready((s_c, i_c))
    assert s_c.shape == (B, TOPK) and i_c.shape == (B, TOPK)
    assert jnp.allclose(s_c, ref_scores, atol=2e-2, rtol=2e-2)

    print("KERNEL_OK")
</pallas_src>

<mosaic_0001>
module attributes {stable_mosaic.version = 11 : i64} {
  func.func @_encode_queries_kernel(%arg0: memref<8x128xf32, #tpu.memory_space<vmem>>, %arg1: memref<128x128xf32, #tpu.memory_space<vmem>>, %arg2: memref<1x128xf32, #tpu.memory_space<vmem>>, %arg3: memref<8x128xf32, #tpu.memory_space<vmem>>) attributes {dimension_semantics = [], scalar_prefetch = 0 : i64, scratch_operands = 0 : i64, tpu.core_type = #tpu.core_type<tc>} {
    %c0 = arith.constant 0 : index
    %c0_0 = arith.constant 0 : index
    %0 = vector.load %arg0[%c0, %c0_0] : memref<8x128xf32, #tpu.memory_space<vmem>>, vector<8x128xf32>
    %c0_1 = arith.constant 0 : index
    %c0_2 = arith.constant 0 : index
    %1 = vector.load %arg1[%c0_1, %c0_2] : memref<128x128xf32, #tpu.memory_space<vmem>>, vector<128x128xf32>
    %cst = arith.constant dense<0.000000e+00> : vector<8x128xf32>
    %2 = tpu.matmul %0, %1, %cst {dimension_numbers = #tpu.dot_dimension_numbers<[1], [0], [0], [1], [0, 0, 1, 1], [], []>} : vector<8x128xf32>, vector<128x128xf32>, vector<8x128xf32> -> vector<8x128xf32>
    %c0_3 = arith.constant 0 : index
    %c0_4 = arith.constant 0 : index
    %3 = vector.load %arg2[%c0_3, %c0_4] : memref<1x128xf32, #tpu.memory_space<vmem>>, vector<1x128xf32>
    %4 = vector.broadcast %3 : vector<1x128xf32> to vector<8x128xf32>
    %5 = arith.addf %2, %4 : vector<8x128xf32>
    %6 = arith.mulf %5, %5 : vector<8x128xf32>
    %cst_5 = arith.constant dense<0.000000e+00> : vector<8xf32>
    %7 = vector.multi_reduction <add>, %6, %cst_5 [1] : vector<8x128xf32> to vector<8xf32>
    %8 = vector.shape_cast %7 : vector<8xf32> to vector<8x1xf32>
    %cst_6 = arith.constant 9.99999996E-13 : f32
    %9 = vector.broadcast %cst_6 : f32 to vector<8x1xf32>
    %10 = arith.addf %8, %9 : vector<8x1xf32>
    %11 = math.rsqrt %10 : vector<8x1xf32>
    %12 = vector.broadcast %11 : vector<8x1xf32> to vector<8x128xf32>
    %13 = arith.mulf %5, %12 : vector<8x128xf32>
    %c0_7 = arith.constant 0 : index
    %c0_8 = arith.constant 0 : index
    %14 = vector.load %arg3[%c0_7, %c0_8] : memref<8x128xf32, #tpu.memory_space<vmem>>, vector<8x128xf32>
    tpu.vector_store %arg3[%c0_7, %c0_8], %13 {strides = array<i32>} : memref<8x128xf32, #tpu.memory_space<vmem>>, vector<8x128xf32>,
    return
  }
}

module attributes {stable_mosaic.version = 11 : i64} {
  func.func @_score_topk_kernel(%arg0: i32, %arg1: memref<8x128xf32, #tpu.memory_space<vmem>>, %arg2: memref<512x128xf32, #tpu.memory_space<vmem>>, %arg3: memref<1x8x10xf32, #tpu.memory_space<vmem>>, %arg4: memref<1x8x10xi32, #tpu.memory_space<vmem>>) attributes {dimension_semantics = [#tpu.dimension_semantics<parallel>], iteration_bounds = array<i64: 4>, scalar_prefetch = 0 : i64, scratch_operands = 0 : i64, tpu.core_type = #tpu.core_type<tc>, window_params = [{pipeline_mode = #tpu.pipeline_mode<synchronous>, transform_indices = @transform_0, window_bounds = array<i64: 8, 128>}, {transform_indices = @transform_1, window_bounds = array<i64: 512, 128>}, {transform_indices = @transform_2, window_bounds = array<i64: 1, 8, 10>}, {transform_indices = @transform_3, window_bounds = array<i64: 1, 8, 10>}]} {
    %c0 = arith.constant 0 : index
    %c0_0 = arith.constant 0 : index
    %0 = vector.load %arg1[%c0, %c0_0] : memref<8x128xf32, #tpu.memory_space<vmem>>, vector<8x128xf32>
    %c0_1 = arith.constant 0 : index
    %c0_2 = arith.constant 0 : index
    %1 = vector.load %arg2[%c0_1, %c0_2] : memref<512x128xf32, #tpu.memory_space<vmem>>, vector<512x128xf32>
    %cst = arith.constant dense<0.000000e+00> : vector<8x512xf32>
    %2 = tpu.matmul %0, %1, %cst {dimension_numbers = #tpu.dot_dimension_numbers<[1], [1], [0], [0], [0, 0, 1, 0], [], []>} : vector<8x128xf32>, vector<512x128xf32>, vector<8x512xf32> -> vector<8x512xf32>
    %3 = tpu.iota {dimensions = array<i32: 1>} : vector<8x512xi32>
    %c512_i32 = arith.constant 512 : i32
    %4 = arith.muli %arg0, %c512_i32 : i32
    %5 = vector.broadcast %4 : i32 to vector<8x512xi32>
    %6 = arith.addi %3, %5 : vector<8x512xi32>
    %c2000_i32 = arith.constant 2000 : i32
    %7 = vector.broadcast %c2000_i32 : i32 to vector<8x512xi32>
    %8 = arith.cmpi slt, %6, %7 : vector<8x512xi32>
    %cst_3 = arith.constant 0xFF800000 : f32
    %9 = vector.broadcast %cst_3 : f32 to vector<8x512xf32>
    %10 = arith.select %8, %2, %9 : vector<8x512xi1>, vector<8x512xf32>
    %cst_4 = arith.constant dense<0xFF800000> : vector<8xf32>
    %11 = vector.multi_reduction <maximumf>, %10, %cst_4 [1] : vector<8x512xf32> to vector<8xf32>
    %12 = vector.shape_cast %11 : vector<8xf32> to vector<8x1xf32>
    %13 = vector.broadcast %12 : vector<8x1xf32> to vector<8x512xf32>
    %14 = arith.cmpf oeq, %10, %13 : vector<8x512xf32>
    %c512_i32_5 = arith.constant 512 : i32
    %15 = vector.broadcast %c512_i32_5 : i32 to vector<8x512xi32>
    %16 = arith.select %14, %3, %15 : vector<8x512xi1>, vector<8x512xi32>
    %cst_6 = arith.constant dense<2147483647> : vector<8xi32>
    %17 = vector.multi_reduction <minsi>, %16, %cst_6 [1] : vector<8x512xi32> to vector<8xi32>
    %18 = vector.shape_cast %17 : vector<8xi32> to vector<8x1xi32>
    %c512_i32_7 = arith.constant 512 : i32
    %19 = arith.muli %arg0, %c512_i32_7 : i32
    %20 = vector.broadcast %19 : i32 to vector<8x1xi32>
    %21 = arith.addi %18, %20 : vector<8x1xi32>
    %22 = vector.broadcast %18 : vector<8x1xi32> to vector<8x512xi32>
    %23 = arith.cmpi eq, %3, %22 : vector<8x512xi32>
    %cst_8 = arith.constant 0xFF800000 : f32
    %24 = vector.broadcast %cst_8 : f32 to vector<8x512xf32>
    %25 = arith.select %23, %24, %10 : vector<8x512xi1>, vector<8x512xf32>
    %cst_9 = arith.constant dense<0xFF800000> : vector<8xf32>
    %26 = vector.multi_reduction <maximumf>, %25, %cst_9 [1] : vector<8x512xf32> to vector<8xf32>
    %27 = vector.shape_cast %26 : vector<8xf32> to vector<8x1xf32>
    %28 = vector.broadcast %27 : vector<8x1xf32> to vector<8x512xf32>
    %29 = arith.cmpf oeq, %25, %28 : vector<8x512xf32>
    %c512_i32_10 = arith.constant 512 : i32
    %30 = vector.broadcast %c512_i32_10 : i32 to vector<8x512xi32>
    %31 = arith.select %29, %3, %30 : vector<8x512xi1>, vector<8x512xi32>
    %cst_11 = arith.constant dense<2147483647> : vector<8xi32>
    %32 = vector.multi_reduction <minsi>, %31, %cst_11 [1] : vector<8x512xi32> to vector<8xi32>
    %33 = vector.shape_cast %32 : vector<8xi32> to vector<8x1xi32>
    %c512_i32_12 = arith.constant 512 : i32
    %34 = arith.muli %arg0, %c512_i32_12 : i32
    %35 = vector.broadcast %34 : i32 to vector<8x1xi32>
    %36 = arith.addi %33, %35 : vector<8x1xi32>
    %37 = vector.broadcast %33 : vector<8x1xi32> to vector<8x512xi32>
    %38 = arith.cmpi eq, %3, %37 : vector<8x512xi32>
    %cst_13 = arith.constant 0xFF800000 : f32
    %39 = vector.broadcast %cst_13 : f32 to vector<8x512xf32>
    %40 = arith.select %38, %39, %25 : vector<8x512xi1>, vector<8x512xf32>
    %cst_14 = arith.constant dense<0xFF800000> : vector<8xf32>
    %41 = vector.multi_reduction <maximumf>, %40, %cst_14 [1] : vector<8x512xf32> to vector<8xf32>
    %42 = vector.shape_cast %41 : vector<8xf32> to vector<8x1xf32>
    %43 = vector.broadcast %42 : vector<8x1xf32> to vector<8x512xf32>
    %44 = arith.cmpf oeq, %40, %43 : vector<8x512xf32>
    %c512_i32_15 = arith.constant 512 : i32
    %45 = vector.broadcast %c512_i32_15 : i32 to vector<8x512xi32>
    %46 = arith.select %44, %3, %45 : vector<8x512xi1>, vector<8x512xi32>
    %cst_16 = arith.constant dense<2147483647> : vector<8xi32>
    %47 = vector.multi_reduction <minsi>, %46, %cst_16 [1] : vector<8x512xi32> to vector<8xi32>
    %48 = vector.shape_cast %47 : vector<8xi32> to vector<8x1xi32>
    %c512_i32_17 = arith.constant 512 : i32
    %49 = arith.muli %arg0, %c512_i32_17 : i32
    %50 = vector.broadcast %49 : i32 to vector<8x1xi32>
    %51 = arith.addi %48, %50 : vector<8x1xi32>
    %52 = vector.broadcast %48 : vector<8x1xi32> to vector<8x512xi32>
    %53 = arith.cmpi eq, %3, %52 : vector<8x512xi32>
    %cst_18 = arith.constant 0xFF800000 : f32
    %54 = vector.broadcast %cst_18 : f32 to vector<8x512xf32>
    %55 = arith.select %53, %54, %40 : vector<8x512xi1>, vector<8x512xf32>
    %cst_19 = arith.constant dense<0xFF800000> : vector<8xf32>
    %56 = vector.multi_reduction <maximumf>, %55, %cst_19 [1] : vector<8x512xf32> to vector<8xf32>
    %57 = vector.shape_cast %56 : vector<8xf32> to vector<8x1xf32>
    %58 = vector.broadcast %57 : vector<8x1xf32> to vector<8x512xf32>
    %59 = arith.cmpf oeq, %55, %58 : vector<8x512xf32>
    %c512_i32_20 = arith.constant 512 : i32
    %60 = vector.broadcast %c512_i32_20 : i32 to vector<8x512xi32>
    %61 = arith.select %59, %3, %60 : vector<8x512xi1>, vector<8x512xi32>
    %cst_21 = arith.constant dense<2147483647> : vector<8xi32>
    %62 = vector.multi_reduction <minsi>, %61, %cst_21 [1] : vector<8x512xi32> to vector<8xi32>
    %63 = vector.shape_cast %62 : vector<8xi32> to vector<8x1xi32>
    %c512_i32_22 = arith.constant 512 : i32
    %64 = arith.muli %arg0, %c512_i32_22 : i32
    %65 = vector.broadcast %64 : i32 to vector<8x1xi32>
    %66 = arith.addi %63, %65 : vector<8x1xi32>
    %67 = vector.broadcast %63 : vector<8x1xi32> to vector<8x512xi32>
    %68 = arith.cmpi eq, %3, %67 : vector<8x512xi32>
    %cst_23 = arith.constant 0xFF800000 : f32
    %69 = vector.broadcast %cst_23 : f32 to vector<8x512xf32>
    %70 = arith.select %68, %69, %55 : vector<8x512xi1>, vector<8x512xf32>
    %cst_24 = arith.constant dense<0xFF800000> : vector<8xf32>
    %71 = vector.multi_reduction <maximumf>, %70, %cst_24 [1] : vector<8x512xf32> to vector<8xf32>
    %72 = vector.shape_cast %71 : vector<8xf32> to vector<8x1xf32>
    %73 = vector.broadcast %72 : vector<8x1xf32> to vector<8x512xf32>
    %74 = arith.cmpf oeq, %70, %73 : vector<8x512xf32>
    %c512_i32_25 = arith.constant 512 : i32
    %75 = vector.broadcast %c512_i32_25 : i32 to vector<8x512xi32>
    %76 = arith.select %74, %3, %75 : vector<8x512xi1>, vector<8x512xi32>
    %cst_26 = arith.constant dense<2147483647> : vector<8xi32>
    %77 = vector.multi_reduction <minsi>, %76, %cst_26 [1] : vector<8x512xi32> to vector<8xi32>
    %78 = vector.shape_cast %77 : vector<8xi32> to vector<8x1xi32>
    %c512_i32_27 = arith.constant 512 : i32
    %79 = arith.muli %arg0, %c512_i32_27 : i32
    %80 = vector.broadcast %79 : i32 to vector<8x1xi32>
    %81 = arith.addi %78, %80 : vector<8x1xi32>
    %82 = vector.broadcast %78 : vector<8x1xi32> to vector<8x512xi32>
    %83 = arith.cmpi eq, %3, %82 : vector<8x512xi32>
    %cst_28 = arith.constant 0xFF800000 : f32
    %84 = vector.broadcast %cst_28 : f32 to vector<8x512xf32>
    %85 = arith.select %83, %84, %70 : vector<8x512xi1>, vector<8x512xf32>
    %cst_29 = arith.constant dense<0xFF800000> : vector<8xf32>
    %86 = vector.multi_reduction <maximumf>, %85, %cst_29 [1] : vector<8x512xf32> to vector<8xf32>
    %87 = vector.shape_cast %86 : vector<8xf32> to vector<8x1xf32>
    %88 = vector.broadcast %87 : vector<8x1xf32> to vector<8x512xf32>
    %89 = arith.cmpf oeq, %85, %88 : vector<8x512xf32>
    %c512_i32_30 = arith.constant 512 : i32
    %90 = vector.broadcast %c512_i32_30 : i32 to vector<8x512xi32>
    %91 = arith.select %89, %3, %90 : vector<8x512xi1>, vector<8x512xi32>
    %cst_31 = arith.constant dense<2147483647> : vector<8xi32>
    %92 = vector.multi_reduction <minsi>, %91, %cst_31 [1] : vector<8x512xi32> to vector<8xi32>
    %93 = vector.shape_cast %92 : vector<8xi32> to vector<8x1xi32>
    %c512_i32_32 = arith.constant 512 : i32
    %94 = arith.muli %arg0, %c512_i32_32 : i32
    %95 = vector.broadcast %94 : i32 to vector<8x1xi32>
    %96 = arith.addi %93, %95 : vector<8x1xi32>
    %97 = vector.broadcast %93 : vector<8x1xi32> to vector<8x512xi32>
    %98 = arith.cmpi eq, %3, %97 : vector<8x512xi32>
    %cst_33 = arith.constant 0xFF800000 : f32
    %99 = vector.broadcast %cst_33 : f32 to vector<8x512xf32>
    %100 = arith.select %98, %99, %85 : vector<8x512xi1>, vector<8x512xf32>
    %cst_34 = arith.constant dense<0xFF800000> : vector<8xf32>
    %101 = vector.multi_reduction <maximumf>, %100, %cst_34 [1] : vector<8x512xf32> to vector<8xf32>
    %102 = vector.shape_cast %101 : vector<8xf32> to vector<8x1xf32>
    %103 = vector.broadcast %102 : vector<8x1xf32> to vector<8x512xf32>
    %104 = arith.cmpf oeq, %100, %103 : vector<8x512xf32>
    %c512_i32_35 = arith.constant 512 : i32
    %105 = vector.broadcast %c512_i32_35 : i32 to vector<8x512xi32>
    %106 = arith.select %104, %3, %105 : vector<8x512xi1>, vector<8x512xi32>
    %cst_36 = arith.constant dense<2147483647> : vector<8xi32>
    %107 = vector.multi_reduction <minsi>, %106, %cst_36 [1] : vector<8x512xi32> to vector<8xi32>
    %108 = vector.shape_cast %107 : vector<8xi32> to vector<8x1xi32>
    %c512_i32_37 = arith.constant 512 : i32
    %109 = arith.muli %arg0, %c512_i32_37 : i32
    %110 = vector.broadcast %109 : i32 to vector<8x1xi32>
    %111 = arith.addi %108, %110 : vector<8x1xi32>
    %112 = vector.broadcast %108 : vector<8x1xi32> to vector<8x512xi32>
    %113 = arith.cmpi eq, %3, %112 : vector<8x512xi32>
    %cst_38 = arith.constant 0xFF800000 : f32
    %114 = vector.broadcast %cst_38 : f32 to vector<8x512xf32>
    %115 = arith.select %113, %114, %100 : vector<8x512xi1>, vector<8x512xf32>
    %cst_39 = arith.constant dense<0xFF800000> : vector<8xf32>
    %116 = vector.multi_reduction <maximumf>, %115, %cst_39 [1] : vector<8x512xf32> to vector<8xf32>
    %117 = vector.shape_cast %116 : vector<8xf32> to vector<8x1xf32>
    %118 = vector.broadcast %117 : vector<8x1xf32> to vector<8x512xf32>
    %119 = arith.cmpf oeq, %115, %118 : vector<8x512xf32>
    %c512_i32_40 = arith.constant 512 : i32
    %120 = vector.broadcast %c512_i32_40 : i32 to vector<8x512xi32>
    %121 = arith.select %119, %3, %120 : vector<8x512xi1>, vector<8x512xi32>
    %cst_41 = arith.constant dense<2147483647> : vector<8xi32>
    %122 = vector.multi_reduction <minsi>, %121, %cst_41 [1] : vector<8x512xi32> to vector<8xi32>
    %123 = vector.shape_cast %122 : vector<8xi32> to vector<8x1xi32>
    %c512_i32_42 = arith.constant 512 : i32
    %124 = arith.muli %arg0, %c512_i32_42 : i32
    %125 = vector.broadcast %124 : i32 to vector<8x1xi32>
    %126 = arith.addi %123, %125 : vector<8x1xi32>
    %127 = vector.broadcast %123 : vector<8x1xi32> to vector<8x512xi32>
    %128 = arith.cmpi eq, %3, %127 : vector<8x512xi32>
    %cst_43 = arith.constant 0xFF800000 : f32
    %129 = vector.broadcast %cst_43 : f32 to vector<8x512xf32>
    %130 = arith.select %128, %129, %115 : vector<8x512xi1>, vector<8x512xf32>
    %cst_44 = arith.constant dense<0xFF800000> : vector<8xf32>
    %131 = vector.multi_reduction <maximumf>, %130, %cst_44 [1] : vector<8x512xf32> to vector<8xf32>
    %132 = vector.shape_cast %131 : vector<8xf32> to vector<8x1xf32>
    %133 = vector.broadcast %132 : vector<8x1xf32> to vector<8x512xf32>
    %134 = arith.cmpf oeq, %130, %133 : vector<8x512xf32>
    %c512_i32_45 = arith.constant 512 : i32
    %135 = vector.broadcast %c512_i32_45 : i32 to vector<8x512xi32>
    %136 = arith.select %134, %3, %135 : vector<8x512xi1>, vector<8x512xi32>
    %cst_46 = arith.constant dense<2147483647> : vector<8xi32>
    %137 = vector.multi_reduction <minsi>, %136, %cst_46 [1] : vector<8x512xi32> to vector<8xi32>
    %138 = vector.shape_cast %137 : vector<8xi32> to vector<8x1xi32>
    %c512_i32_47 = arith.constant 512 : i32
    %139 = arith.muli %arg0, %c512_i32_47 : i32
    %140 = vector.broadcast %139 : i32 to vector<8x1xi32>
    %141 = arith.addi %138, %140 : vector<8x1xi32>
    %142 = vector.broadcast %138 : vector<8x1xi32> to vector<8x512xi32>
    %143 = arith.cmpi eq, %3, %142 : vector<8x512xi32>
    %cst_48 = arith.constant 0xFF800000 : f32
    %144 = vector.broadcast %cst_48 : f32 to vector<8x512xf32>
    %145 = arith.select %143, %144, %130 : vector<8x512xi1>, vector<8x512xf32>
    %cst_49 = arith.constant dense<0xFF800000> : vector<8xf32>
    %146 = vector.multi_reduction <maximumf>, %145, %cst_49 [1] : vector<8x512xf32> to vector<8xf32>
    %147 = vector.shape_cast %146 : vector<8xf32> to vector<8x1xf32>
    %148 = vector.broadcast %147 : vector<8x1xf32> to vector<8x512xf32>
    %149 = arith.cmpf oeq, %145, %148 : vector<8x512xf32>
    %c512_i32_50 = arith.constant 512 : i32
    %150 = vector.broadcast %c512_i32_50 : i32 to vector<8x512xi32>
    %151 = arith.select %149, %3, %150 : vector<8x512xi1>, vector<8x512xi32>
    %cst_51 = arith.constant dense<2147483647> : vector<8xi32>
    %152 = vector.multi_reduction <minsi>, %151, %cst_51 [1] : vector<8x512xi32> to vector<8xi32>
    %153 = vector.shape_cast %152 : vector<8xi32> to vector<8x1xi32>
    %c512_i32_52 = arith.constant 512 : i32
    %154 = arith.muli %arg0, %c512_i32_52 : i32
    %155 = vector.broadcast %154 : i32 to vector<8x1xi32>
    %156 = arith.addi %153, %155 : vector<8x1xi32>
    %157 = tpu.concatenate %12, %27, %42, %57, %72, %87, %102, %117, %132, %147 in 1 : vector<8x1xf32>, vector<8x1xf32>, vector<8x1xf32>, vector<8x1xf32>, vector<8x1xf32>, vector<8x1xf32>, vector<8x1xf32>, vector<8x1xf32>, vector<8x1xf32>, vector<8x1xf32> -> vector<8x10xf32>
    %c0_53 = arith.constant 0 : index
    %c0_54 = arith.constant 0 : index
    %c0_55 = arith.constant 0 : index
    %158 = vector.load %arg3[%c0_53, %c0_54, %c0_55] : memref<1x8x10xf32, #tpu.memory_space<vmem>>, vector<1x8x10xf32>
    %159 = vector.shape_cast %158 : vector<1x8x10xf32> to vector<8x10xf32>
    %160 = vector.shape_cast %157 : vector<8x10xf32> to vector<1x8x10xf32>
    tpu.vector_store %arg3[%c0_53, %c0_54, %c0_55], %160 {strides = array<i32>} : memref<1x8x10xf32, #tpu.memory_space<vmem>>, vector<1x8x10xf32>,
    %161 = tpu.concatenate %21, %36, %51, %66, %81, %96, %111, %126, %141, %156 in 1 : vector<8x1xi32>, vector<8x1xi32>, vector<8x1xi32>, vector<8x1xi32>, vector<8x1xi32>, vector<8x1xi32>, vector<8x1xi32>, vector<8x1xi32>, vector<8x1xi32>, vector<8x1xi32> -> vector<8x10xi32>
    %c0_56 = arith.constant 0 : index
    %c0_57 = arith.constant 0 : index
    %c0_58 = arith.constant 0 : index
    %162 = vector.load %arg4[%c0_56, %c0_57, %c0_58] : memref<1x8x10xi32, #tpu.memory_space<vmem>>, vector<1x8x10xi32>
    %163 = vector.shape_cast %162 : vector<1x8x10xi32> to vector<8x10xi32>
    %164 = vector.shape_cast %161 : vector<8x10xi32> to vector<1x8x10xi32>
    tpu.vector_store %arg4[%c0_56, %c0_57, %c0_58], %164 {strides = array<i32>} : memref<1x8x10xi32, #tpu.memory_space<vmem>>, vector<1x8x10xi32>,
    return
  }
  func.func @transform_0(%arg0: i32) -> (i32, i32) {
    %c0_i32 = arith.constant 0 : i32
    %c0_i32_0 = arith.constant 0 : i32
    %c0_i32_1 = arith.constant 0 : i32
    return %c0_i32, %c0_i32_0 : i32, i32
  }
  func.func @transform_1(%arg0: i32) -> (i32, i32) {
    %c0_i32 = arith.constant 0 : i32
    %c0_i32_0 = arith.constant 0 : i32
    return %arg0, %c0_i32 : i32, i32
  }
  func.func @transform_2(%arg0: i32) -> (i32, i32, i32) {
    %c0_i32 = arith.constant 0 : i32
    %c0_i32_0 = arith.constant 0 : i32
    %c0_i32_1 = arith.constant 0 : i32
    return %arg0, %c0_i32, %c0_i32_0 : i32, i32, i32
  }
  func.func @transform_3(%arg0: i32) -> (i32, i32, i32) {
    %c0_i32 = arith.constant 0 : i32
    %c0_i32_0 = arith.constant 0 : i32
    %c0_i32_1 = arith.constant 0 : i32
    return %arg0, %c0_i32, %c0_i32_0 : i32, i32, i32
  }
}

</mosaic_0001>

<bundles_post_ra>
// kernel: retrieve_topk.2
= control target key start
LH: loop header
LB: loop body
LE: loop exit
PB: predicated region body
PF: predicated region fallthrough
CT: control target
= control target key end

     0   :  { %s155_s1 = inlined_call_operand.vmem [shape: f32[128,128], index: 1, kind: input, shape index: {}]   ;;  %s156_s2 = inlined_call_operand.vmem [shape: f32[1,128], index: 2, kind: input, shape index: {}]   ;;  %s157_s0 = inlined_call_operand.vmem [shape: f32[8,128], index: 0, kind: input, shape index: {}]   ;;  %s158_s3 = inlined_call_operand.vmem [shape: f32[8,128], index: 3, kind: output, shape index: {}]  }
   0x1   :  { %v30_v0 = vld [vmem:[%s155_s1 + $0x78] sm:$0xff]  ;;  %v29_v1 = vld [vmem:[%s155_s1 + $0x70] sm:$0xff]  ;;  %v28_v2 = vld [vmem:[%s155_s1 + $0x68] sm:$0xff] }
   0x2   :  { %35 = vmatpush.msra.mxu0 %v30_v0  ;;  %v27_v3 = vld [vmem:[%s155_s1 + $0x60] sm:$0xff]  ;;  %v26_v4 = vld [vmem:[%s155_s1 + $0x58] sm:$0xff]  ;;  %v25_v5 = vld [vmem:[%s155_s1 + $0x50] sm:$0xff] }
   0x3   :  { %v24_v6 = vld [vmem:[%s155_s1 + $0x48] sm:$0xff]  ;;  %v23_v7 = vld [vmem:[%s155_s1 + $0x40] sm:$0xff]  ;;  %v22_v8 = vld [vmem:[%s155_s1 + $0x38] sm:$0xff] }
   0x4   :  { %36 = vmatpush.msra.mxu0 %v29_v1  ;;  %v21_v9 = vld [vmem:[%s155_s1 + $0x30] sm:$0xff]  ;;  %v20_v10 = vld [vmem:[%s155_s1 + $0x28] sm:$0xff]  ;;  %v19_v11 = vld [vmem:[%s155_s1 + $0x20] sm:$0xff] }
   0x5   :  { %v18_v12 = vld [vmem:[%s155_s1 + $0x18] sm:$0xff]  ;;  %v17_v13 = vld [vmem:[%s155_s1 + $0x10] sm:$0xff]  ;;  %v16_v14 = vld [vmem:[%s155_s1 + $0x8] sm:$0xff] }
   0x6   :  { %37 = vmatpush.msra.mxu0 %v28_v2  ;;  %v15_v15 = vld [vmem:[%s155_s1] sm:$0xff] }
   0x7   :  { %v14_v16 = vld [vmem:[%s157_s0] sm:$0xff] }
   0x8   :  { %38 = vmatpush.msra.mxu0 %v27_v3  ;;  %v75_v17 = vld [vmem:[%s156_s2] ss:$0 sm:$0xff] }
   0xa   :  { %39 = vmatpush.msra.mxu0 %v26_v4 }
   0xc   :  { %40 = vmatpush.msra.mxu0 %v25_v5 }
   0xe   :  { %41 = vmatpush.msra.mxu0 %v24_v6 }
  0x10   :  { %42 = vmatpush.msra.mxu0 %v23_v7 }
  0x12   :  { %43 = vmatpush.msra.mxu0 %v22_v8 }
  0x14   :  { %44 = vmatpush.msra.mxu0 %v21_v9 }
  0x16   :  { %45 = vmatpush.msra.mxu0 %v20_v10 }
  0x18   :  { %46 = vmatpush.msra.mxu0 %v19_v11 }
  0x1a   :  { %47 = vmatpush.msra.mxu0 %v18_v12 }
  0x1c   :  { %48 = vmatpush.msra.mxu0 %v17_v13 }
  0x1e   :  { %49 = vmatpush.msra.mxu0 %v16_v14 }
  0x20   :  { %50 = vmatpush.msra.mxu0 %v15_v15 }
  0x21   :  { %51 = vmatmul.f32.vlgmr.msra.gmra.mxu0 %v14_v16 }
  0x9e   :  { %v52_v18 = vpop.f32.mrf.mxu0 }
  0x9f   :  { %v53_v19 = vadd.f32 %v75_v17, %v52_v18 }
  0xa1   :  { %v55_v20 = vmul.f32 %v53_v19, %v53_v19 }
  0xa3   :  { %56 = vadd.xlane.f32.xlu0 %v55_v20 }
 0x116   :  { %v57_v21 = vpop.xlane.xlu0 %56 }
 0x117   :  { %v58_v22 = vadd.f32 1e-12, %v57_v21 }
 0x119   :  { %76 = vrsqrt.f32 %v58_v22  ;;  %vm65_vm1 = vweird.f32 %v58_v22 }
 0x11f   :  { %v77_v23 = vpop.eup %76 }
 0x120   :  { %v60_v24 = vmul.f32 %v77_v23, %v58_v22  ;;  %vm66_vm0 = vweird.f32 %v77_v23 }
 0x121   :  { %vm67_vm2 = vmor %vm65_vm1, %vm66_vm0 }
 0x122   :  { %v61_v25 = vmul.f32 %v77_v23, %v60_v24 }
 0x124   :  { %v62_v26 = vmul.f32 0.5, %v61_v25 }
 0x126   :  { %v63_v27 = vsub.f32 1.5, %v62_v26 }
 0x128   :  { %v64_v28 = vmul.f32 %v77_v23, %v63_v27 }
 0x12a   :  { %v68_v29 = vsel %vm67_vm2, %v77_v23, %v64_v28 }
 0x12b   :  { %v69_v30 = vmul.f32 %v68_v29, %v53_v19 }
 0x12d   :  { %70 = vst [vmem:[%s158_s3] sm:$0xff] %v69_v30 }

// kernel: retrieve_topk.3
= control target key start
LH: loop header
LB: loop body
LE: loop exit
PB: predicated region body
PF: predicated region fallthrough
CT: control target
= control target key end

     0   :  { %s920_s12 = smov 0   ;;  %s1203_s0 = inlined_call_operand.vmem [shape: f32[8,128], index: 0, kind: input, shape index: {}]   ;;  %s1204_s1 = inlined_call_operand.vmem [shape: f32[2048,128], index: 1, kind: input, shape index: {}]   ;;  %s1205_s2 = inlined_call_operand.vmem [shape: f32[4,8,10], index: 2, kind: output, shape index: {0}]   ;;  %s1206_s3 = inlined_call_operand.vmem [shape: s32[4,8,10], index: 3, kind: output, shape index: {1}]  }
   0x1 LB: > { %s926_s13 = sadd.s32 4294967295, %s898_s12   ;;  %p876_p0 = scmp.ge.s32.totalorder %s898_s12, 1  ;;  %s898_s12 = sphi %s920_s12, %s14_s12  }
   0x2   : > { %p141_p1 = scmp.lt.s32.totalorder %s898_s12, 5 }
   0x4   : > { %p142_p2 = pnand %p876_p0, %p141_p1 }
   0x5   : > { %s877_s14 = sshll.u32 (!%p142_p2), %s926_s13, 6  ;;  %s881_s21 = sshll.u32 (!%p142_p2), %s926_s13, 9 }
   0x6   : > { %145 = sbr.rel (%p142_p2) target bundleno = 3921 (0xf51), region = 28  ;;  %p169_p3 = scmp.lt.s32.totalorder (!%p142_p2), %s877_s14, 255 }
   0x7   : > { %p174_p4 = scmp.lt.s32.totalorder (!%p142_p2), %s926_s13, 3 }
   0xb   : > { %s1208_s14 = smov (!%p169_p3, %s877_s14), 255  ;;  %s1210_s13 = smov (!%p174_p4, %s926_s13), 3 }
   0xc   : > { %s878_s15 = sshll.u32 %s1208_s14, 3  ;;  %s879_s22 = sshll.u32 %s1210_s13, 3 }
   0xd   : > { %s934_s18 = scalar_lea.vmem %s1204_s1, %s878_s15  ;;  %s177_s25 = scalar_lea.vmem %s1205_s2, %s879_s22 }
   0xe   : > { %v230_v0 = vld [vmem:[%s934_s18 + $0x178] sm:$0xff]  ;;  %v229_v4 = vld [vmem:[%s934_s18 + $0x170] sm:$0xff]  ;;  %v228_v8 = vld [vmem:[%s934_s18 + $0x168] sm:$0xff]  ;;  %s181_s28 = scalar_lea.vmem %s1206_s3, %s879_s22 }
   0xf   : > { %v246_v1 = vld [vmem:[%s934_s18 + $0x1f8] sm:$0xff]  ;;  %287 = vmatpush.xpose.msra.mxu2 %v230_v0  ;;  %v245_v5 = vld [vmem:[%s934_s18 + $0x1f0] sm:$0xff]  ;;  %v244_v9 = vld [vmem:[%s934_s18 + $0x1e8] sm:$0xff] }
  0x10   : > { %307 = vmatpush.xpose.msra.mxu3 %v246_v1  ;;  %v198_v2 = vld [vmem:[%s934_s18 + $0x78] sm:$0xff]  ;;  %v197_v6 = vld [vmem:[%s934_s18 + $0x70] sm:$0xff]  ;;  %v196_v10 = vld [vmem:[%s934_s18 + $0x68] sm:$0xff]  ;;  %v327_v1 = vlaneseq }
  0x11   : > { %v214_v3 = vld [vmem:[%s934_s18 + $0xf8] sm:$0xff]  ;;  %247 = vmatpush.xpose.msra.mxu0 %v198_v2  ;;  %v213_v7 = vld [vmem:[%s934_s18 + $0xf0] sm:$0xff]  ;;  %v212_v11 = vld [vmem:[%s934_s18 + $0xe8] sm:$0xff] }
  0x12   : > { %267 = vmatpush.xpose.msra.mxu1 %v214_v3  ;;  %v227_v12 = vld [vmem:[%s934_s18 + $0x160] sm:$0xff]  ;;  %v226_v16 = vld [vmem:[%s934_s18 + $0x158] sm:$0xff]  ;;  %v225_v20 = vld [vmem:[%s934_s18 + $0x150] sm:$0xff]  ;;  %v1003_v2 = vand.u32 127, %v327_v1 }
  0x13   : > { %288 = vmatpush.xpose.msra.mxu2 %v229_v4  ;;  %v243_v13 = vld [vmem:[%s934_s18 + $0x1e0] sm:$0xff]  ;;  %v242_v17 = vld [vmem:[%s934_s18 + $0x1d8] sm:$0xff]  ;;  %v241_v21 = vld [vmem:[%s934_s18 + $0x1d0] sm:$0xff]  ;;  %v1009_v4 = vstv %s881_s21 }
  0x14   : > { %308 = vmatpush.xpose.msra.mxu3 %v245_v5  ;;  %v195_v14 = vld [vmem:[%s934_s18 + $0x60] sm:$0xff]  ;;  %v194_v18 = vld [vmem:[%s934_s18 + $0x58] sm:$0xff]  ;;  %v193_v22 = vld [vmem:[%s934_s18 + $0x50] sm:$0xff]  ;;  %v1007_v3 = vadd.s32 128, %v1003_v2  ;;  %v334_v5 = vadd.s32 %v1009_v4, %v1003_v2 }
  0x15   : > { %248 = vmatpush.xpose.msra.mxu0 %v197_v6  ;;  %v211_v15 = vld [vmem:[%s934_s18 + $0xe0] sm:$0xff]  ;;  %v210_v19 = vld [vmem:[%s934_s18 + $0xd8] sm:$0xff]  ;;  %v209_v23 = vld [vmem:[%s934_s18 + $0xd0] sm:$0xff] }
  0x16   : > { %268 = vmatpush.xpose.msra.mxu1 %v213_v7  ;;  %v224_v24 = vld [vmem:[%s934_s18 + $0x148] sm:$0xff]  ;;  %v223_v28 = vld [vmem:[%s934_s18 + $0x140] sm:$0xff]  ;;  %v222_v32 = vld [vmem:[%s934_s18 + $0x138] sm:$0xff]  ;;  %v335_v6 = vadd.s32 %v1009_v4, %v1007_v3  ;;  %v1016_v7 = vadd.s32 256, %v1003_v2  ;;  %vm338_vm0 = vcmp.lt.s32.totalorder %v334_v5, 2000 }
  0x17   : > { %289 = vmatpush.xpose.msra.mxu2 %v228_v8  ;;  %v240_v25 = vld [vmem:[%s934_s18 + $0x1c8] sm:$0xff]  ;;  %v239_v29 = vld [vmem:[%s934_s18 + $0x1c0] sm:$0xff]  ;;  %v238_v33 = vld [vmem:[%s934_s18 + $0x1b8] sm:$0xff]  ;;  %v1019_v8 = vadd.s32 384, %v1003_v2 }
  0x18   : > { %309 = vmatpush.xpose.msra.mxu3 %v244_v9  ;;  %v192_v26 = vld [vmem:[%s934_s18 + $0x48] sm:$0xff]  ;;  %v191_v30 = vld [vmem:[%s934_s18 + $0x40] sm:$0xff]  ;;  %v190_v34 = vld [vmem:[%s934_s18 + $0x38] sm:$0xff]  ;;  %vm339_vm1 = vcmp.lt.s32.totalorder %v335_v6, 2000  ;;  %v336_v9 = vadd.s32 %v1009_v4, %v1016_v7 }
  0x19   : > { %249 = vmatpush.xpose.msra.mxu0 %v196_v10  ;;  %v208_v27 = vld [vmem:[%s934_s18 + $0xc8] sm:$0xff]  ;;  %v207_v31 = vld [vmem:[%s934_s18 + $0xc0] sm:$0xff]  ;;  %v206_v35 = vld [vmem:[%s934_s18 + $0xb8] sm:$0xff]  ;;  %v337_v10 = vadd.s32 %v1009_v4, %v1019_v8 }
  0x1a   : > { %269 = vmatpush.xpose.msra.mxu1 %v212_v11  ;;  %v221_v36 = vld [vmem:[%s934_s18 + $0x130] sm:$0xff]  ;;  %v220_v40 = vld [vmem:[%s934_s18 + $0x128] sm:$0xff]  ;;  %v219_v44 = vld [vmem:[%s934_s18 + $0x120] sm:$0xff]  ;;  %vm340_vm2 = vcmp.lt.s32.totalorder %v336_v9, 2000 }
  0x1b   : > { %290 = vmatpush.xpose.msra.mxu2 %v227_v12  ;;  %v237_v37 = vld [vmem:[%s934_s18 + $0x1b0] sm:$0xff]  ;;  %v236_v41 = vld [vmem:[%s934_s18 + $0x1a8] sm:$0xff]  ;;  %v235_v45 = vld [vmem:[%s934_s18 + $0x1a0] sm:$0xff]  ;;  %vm341_vm3 = vcmp.lt.s32.totalorder %v337_v10, 2000 }
  0x1c   : > { %310 = vmatpush.xpose.msra.mxu3 %v243_v13  ;;  %v189_v38 = vld [vmem:[%s934_s18 + $0x30] sm:$0xff]  ;;  %v188_v42 = vld [vmem:[%s934_s18 + $0x28] sm:$0xff]  ;;  %v187_v46 = vld [vmem:[%s934_s18 + $0x20] sm:$0xff] }
  0x1d   : > { %250 = vmatpush.xpose.msra.mxu0 %v195_v14  ;;  %v205_v39 = vld [vmem:[%s934_s18 + $0xb0] sm:$0xff]  ;;  %v204_v43 = vld [vmem:[%s934_s18 + $0xa8] sm:$0xff]  ;;  %v203_v47 = vld [vmem:[%s934_s18 + $0xa0] sm:$0xff] }
  0x1e   : > { %270 = vmatpush.xpose.msra.mxu1 %v211_v15  ;;  %v218_v48 = vld [vmem:[%s934_s18 + $0x118] sm:$0xff]  ;;  %v217_v52 = vld [vmem:[%s934_s18 + $0x110] sm:$0xff]  ;;  %v216_v56 = vld [vmem:[%s934_s18 + $0x108] sm:$0xff] }
  0x1f   : > { %291 = vmatpush.xpose.msra.mxu2 %v226_v16  ;;  %v234_v49 = vld [vmem:[%s934_s18 + $0x198] sm:$0xff]  ;;  %v233_v53 = vld [vmem:[%s934_s18 + $0x190] sm:$0xff]  ;;  %v232_v57 = vld [vmem:[%s934_s18 + $0x188] sm:$0xff] }
  0x20   : > { %311 = vmatpush.xpose.msra.mxu3 %v242_v17  ;;  %v186_v50 = vld [vmem:[%s934_s18 + $0x18] sm:$0xff]  ;;  %v185_v54 = vld [vmem:[%s934_s18 + $0x10] sm:$0xff]  ;;  %v184_v58 = vld [vmem:[%s934_s18 + $0x8] sm:$0xff] }
  0x21   : > { %251 = vmatpush.xpose.msra.mxu0 %v194_v18  ;;  %v202_v51 = vld [vmem:[%s934_s18 + $0x98] sm:$0xff]  ;;  %v201_v55 = vld [vmem:[%s934_s18 + $0x90] sm:$0xff]  ;;  %v200_v59 = vld [vmem:[%s934_s18 + $0x88] sm:$0xff] }
  0x22   : > { %271 = vmatpush.xpose.msra.mxu1 %v210_v19  ;;  %v215_v60 = vld [vmem:[%s934_s18 + $0x100] sm:$0xff] }
  0x23   : > { %292 = vmatpush.xpose.msra.mxu2 %v225_v20  ;;  %v231_v61 = vld [vmem:[%s934_s18 + $0x180] sm:$0xff] }
  0x24   : > { %312 = vmatpush.xpose.msra.mxu3 %v241_v21  ;;  %v183_v62 = vld [vmem:[%s934_s18] sm:$0xff] }
  0x25   : > { %252 = vmatpush.xpose.msra.mxu0 %v193_v22  ;;  %v199_v63 = vld [vmem:[%s934_s18 + $0x80] sm:$0xff] }
  0x26   : > { %272 = vmatpush.xpose.msra.mxu1 %v209_v23  ;;  %v182_v0 = vld [vmem:[%s1203_s0] sm:$0xff] }
  0x27   : > { %293 = vmatpush.xpose.msra.mxu2 %v224_v24 }
  0x28   : > { %313 = vmatpush.xpose.msra.mxu3 %v240_v25 }
  0x29   : > { %253 = vmatpush.xpose.msra.mxu0 %v192_v26 }
  0x2a   : > { %273 = vmatpush.xpose.msra.mxu1 %v208_v27 }
  0x2b   : > { %294 = vmatpush.xpose.msra.mxu2 %v223_v28 }
  0x2c   : > { %314 = vmatpush.xpose.msra.mxu3 %v239_v29 }
  0x2d   : > { %254 = vmatpush.xpose.msra.mxu0 %v191_v30 }
  0x2e   : > { %274 = vmatpush.xpose.msra.mxu1 %v207_v31 }
  0x2f   : > { %295 = vmatpush.xpose.msra.mxu2 %v222_v32 }
  0x30   : > { %315 = vmatpush.xpose.msra.mxu3 %v238_v33 }
  0x31   : > { %255 = vmatpush.xpose.msra.mxu0 %v190_v34 }
  0x32   : > { %275 = vmatpush.xpose.msra.mxu1 %v206_v35 }
  0x33   : > { %296 = vmatpush.xpose.msra.mxu2 %v221_v36 }
  0x34   : > { %316 = vmatpush.xpose.msra.mxu3 %v237_v37 }
  0x35   : > { %256 = vmatpush.xpose.msra.mxu0 %v189_v38 }
  0x36   : > { %276 = vmatpush.xpose.msra.mxu1 %v205_v39 }
  0x37   : > { %297 = vmatpush.xpose.msra.mxu2 %v220_v40 }
  0x38   : > { %317 = vmatpush.xpose.msra.mxu3 %v236_v41 }
  0x39   : > { %257 = vmatpush.xpose.msra.mxu0 %v188_v42 }
  0x3a   : > { %277 = vmatpush.xpose.msra.mxu1 %v204_v43 }
  0x3b   : > { %298 = vmatpush.xpose.msra.mxu2 %v219_v44 }
  0x3c   : > { %318 = vmatpush.xpose.msra.mxu3 %v235_v45 }
  0x3d   : > { %258 = vmatpush.xpose.msra.mxu0 %v187_v46 }
  0x3e   : > { %278 = vmatpush.xpose.msra.mxu1 %v203_v47 }
  0x3f   : > { %299 = vmatpush.xpose.msra.mxu2 %v218_v48 }
  0x40   : > { %319 = vmatpush.xpose.msra.mxu3 %v234_v49 }
  0x41   : > { %259 = vmatpush.xpose.msra.mxu0 %v186_v50 }
  0x42   : > { %279 = vmatpush.xpose.msra.mxu1 %v202_v51 }
  0x43   : > { %300 = vmatpush.xpose.msra.mxu2 %v217_v52 }
  0x44   : > { %320 = vmatpush.xpose.msra.mxu3 %v233_v53 }
  0x45   : > { %260 = vmatpush.xpose.msra.mxu0 %v185_v54 }
  0x46   : > { %280 = vmatpush.xpose.msra.mxu1 %v201_v55 }
  0x47   : > { %301 = vmatpush.xpose.msra.mxu2 %v216_v56 }
  0x48   : > { %321 = vmatpush.xpose.msra.mxu3 %v232_v57 }
  0x49   : > { %261 = vmatpush.xpose.msra.mxu0 %v184_v58 }
  0x4a   : > { %281 = vmatpush.xpose.msra.mxu1 %v200_v59 }
  0x4b   : > { %302 = vmatpush.xpose.msra.mxu2 %v215_v60 }
  0x4c   : > { %322 = vmatpush.xpose.msra.mxu3 %v231_v61 }
  0x4d   : > { %262 = vmatpush.xpose.msra.mxu0 %v183_v62 }
  0x4e   : > { %282 = vmatpush.xpose.msra.mxu1 %v199_v63  ;;  %303 = vmatmul.f32.vlgmr.msra.gmra.mxu2 %v182_v0 }
  0x4f   : > { %323 = vmatmul.f32.vlgmr.msra.gmra.mxu3 %v182_v0 }
  0x50   : > { %263 = vmatmul.f32.vlgmr.msra.gmra.mxu0 %v182_v0 }
  0x51   : > { %283 = vmatmul.f32.vlgmr.msra.gmra.mxu1 %v182_v0 }
  0xcd   : > { %v264_v11 = vpop.f32.mrf.mxu0 }
  0xce   : > { %v284_v12 = vpop.f32.mrf.mxu1  ;;  %v342_v13 = vsel %vm338_vm0, %v264_v11, -inf }
  0xcf   : > { %v343_v14 = vsel %vm339_vm1, %v284_v12, -inf }
  0xd0   : > { %v346_v17 = vmax.f32 %v342_v13, %v343_v14 }
  0xd1   : > { %v304_v15 = vpop.f32.mrf.mxu2 }
  0xd2   : > { %v324_v16 = vpop.f32.mrf.mxu3  ;;  %v344_v18 = vsel %vm340_vm2, %v304_v15, -inf }
  0xd3   : > { %v345_v19 = vsel %vm341_vm3, %v324_v16, -inf }
  0xd4   : > { %v347_v20 = vmax.f32 %v344_v18, %v345_v19 }
  0xd6   : > { %v348_v21 = vmax.f32 %v346_v17, %v347_v20 }
  0xd8   : > { %349 = vmax.xlane.f32.xlu0 %v348_v21 }
 0x14b   : > { %v1025_v22 = vpop.xlane.xlu0 %349 }
 0x14c   : > { %vm351_vm4 = vcmp.eq.f32.partialorder %v342_v13, %v1025_v22  ;;  %vm352_vm5 = vcmp.eq.f32.partialorder %v343_v14, %v1025_v22  ;;  %vm353_vm6 = vcmp.eq.f32.partialorder %v344_v18, %v1025_v22  ;;  %vm354_vm7 = vcmp.eq.f32.partialorder %v345_v19, %v1025_v22 }
 0x14d   : > { %v355_v23 = vsel %vm351_vm4, %v1003_v2, 512  ;;  %v356_v24 = vsel %vm352_vm5, %v1007_v3, 512  ;;  %v357_v25 = vsel %vm353_vm6, %v1016_v7, 512  ;;  %v358_v26 = vsel %vm354_vm7, %v1019_v8, 512 }
 0x14e   : > { %vm359_vm8 = vcmp.lt.s32.totalorder %v355_v23, %v356_v24  ;;  %vm361_vm9 = vcmp.lt.s32.totalorder %v357_v25, %v358_v26 }
 0x14f   : > { %v360_v27 = vsel %vm359_vm8, %v355_v23, %v356_v24  ;;  %v362_v28 = vsel %vm361_vm9, %v357_v25, %v358_v26  ;;  %vm758_vm8 = vcmask 7168  }
 0x150   : > { %vm363_vm10 = vcmp.lt.s32.totalorder %v360_v27, %v362_v28 }
 0x151   : > { %v364_v29 = vsel %vm363_vm10, %v360_v27, %v362_v28 }
 0x152   : > { %v366_v30 = vshra.s32 %v364_v29, 16  ;;  %v365_v32 = vand.u32 65535, %v364_v29 }
 0x154   : > { %v368_v31 = vcvt.s32.f32 %v366_v30  ;;  %v367_v34 = vcvt.s32.f32 %v365_v32 }
 0x156   : > { %369 = vmin.xlane.f32.xlu0 %v368_v31 }
 0x1c9   : > { %v370_v33 = vpop.xlane.xlu0 %369 }
 0x1ca   : > { %vm371_vm11 = vcmp.eq.f32.partialorder %v368_v31, %v370_v33  ;;  %v376_v36 = vcvt.f32.s32 %v370_v33 }
 0x1cb   : > { %v372_v35 = vsel %vm371_vm11, %v367_v34, inf }
 0x1cc   : > { %373 = vmin.xlane.f32.xlu1 %v372_v35  ;;  %v377_v38 = vshll.u32 %v376_v36, 16 }
 0x23f   : > { %v374_v37 = vpop.xlane.xlu1 %373 }
 0x240   : > { %v375_v39 = vcvt.f32.s32 %v374_v37 }
 0x242   : > { %v378_v40 = vadd.s32 %v377_v38, %v375_v39 }
 0x244   : > { %vm380_vm12 = vcmp.eq.s32.totalorder %v1003_v2, %v378_v40  ;;  %vm381_vm13 = vcmp.eq.s32.totalorder %v1007_v3, %v378_v40  ;;  %vm382_vm14 = vcmp.eq.s32.totalorder %v1016_v7, %v378_v40  ;;  %vm383_vm15 = vcmp.eq.s32.totalorder %v1019_v8, %v378_v40 }
 0x245   : > { %v384_v41 = vsel %vm380_vm12, -inf, %v342_v13  ;;  %v385_v42 = vsel %vm381_vm13, -inf, %v343_v14  ;;  %v386_v43 = vsel %vm382_vm14, -inf, %v344_v18  ;;  %v387_v44 = vsel %vm383_vm15, -inf, %v345_v19 }
 0x246   : > { %v388_v45 = vmax.f32 %v384_v41, %v385_v42  ;;  %v389_v46 = vmax.f32 %v386_v43, %v387_v44  ;;  %v379_v6 = vadd.s32 %v378_v40, %v1009_v4 }
 0x248   : > { %v390_v47 = vmax.f32 %v388_v45, %v389_v46 }
 0x24a   : > { %391 = vmax.xlane.f32.xlu1 %v390_v47 }
 0x2bd   : > { %v1039_v48 = vpop.xlane.xlu1 %391 }
 0x2be   : > { %vm393_vm0 = vcmp.eq.f32.partialorder %v384_v41, %v1039_v48  ;;  %vm394_vm1 = vcmp.eq.f32.partialorder %v385_v42, %v1039_v48  ;;  %vm395_vm2 = vcmp.eq.f32.partialorder %v386_v43, %v1039_v48  ;;  %vm396_vm3 = vcmp.eq.f32.partialorder %v387_v44, %v1039_v48 }
 0x2bf   : > { %v397_v49 = vsel %vm393_vm0, %v1003_v2, 512  ;;  %v398_v50 = vsel %vm394_vm1, %v1007_v3, 512  ;;  %v399_v51 = vsel %vm395_vm2, %v1016_v7, 512  ;;  %v400_v52 = vsel %vm396_vm3, %v1019_v8, 512 }
 0x2c0   : > { %vm401_vm4 = vcmp.lt.s32.totalorder %v397_v49, %v398_v50  ;;  %vm403_vm5 = vcmp.lt.s32.totalorder %v399_v51, %v400_v52 }
 0x2c1   : > { %v402_v53 = vsel %vm401_vm4, %v397_v49, %v398_v50  ;;  %v404_v54 = vsel %vm403_vm5, %v399_v51, %v400_v52  ;;  %vm760_vm5 = vcmask 15360  }
 0x2c2   : > { %vm405_vm6 = vcmp.lt.s32.totalorder %v402_v53, %v404_v54 }
 0x2c3   : > { %v406_v55 = vsel %vm405_vm6, %v402_v53, %v404_v54 }
 0x2c4   : > { %v408_v56 = vshra.s32 %v406_v55, 16  ;;  %v407_v58 = vand.u32 65535, %v406_v55 }
 0x2c6   : > { %v410_v57 = vcvt.s32.f32 %v408_v56  ;;  %v409_v60 = vcvt.s32.f32 %v407_v58 }
 0x2c8   : > { %411 = vmin.xlane.f32.xlu2 %v410_v57 }
 0x33b   : > { %v412_v59 = vpop.xlane.xlu2 %411 }
 0x33c   : > { %vm413_vm7 = vcmp.eq.f32.partialorder %v410_v57, %v412_v59  ;;  %v418_v62 = vcvt.f32.s32 %v412_v59 }
 0x33d   : > { %v414_v61 = vsel %vm413_vm7, %v409_v60, inf }
 0x33e   : > { %415 = vmin.xlane.f32.xlu2 %v414_v61  ;;  %v419_v0 = vshll.u32 %v418_v62, 16 }
 0x3b1   : > { %v416_v63 = vpop.xlane.xlu2 %415 }
 0x3b2   : > { %v417_v1 = vcvt.f32.s32 %v416_v63 }
 0x3b4   : > { %v420_v5 = vadd.s32 %v419_v0, %v417_v1 }
 0x3b6   : > { %v421_v9 = vadd.s32 %v420_v5, %v1009_v4  ;;  %vm422_vm9 = vcmp.eq.s32.totalorder %v1003_v2, %v420_v5  ;;  %vm423_vm10 = vcmp.eq.s32.totalorder %v1007_v3, %v420_v5  ;;  %vm424_vm11 = vcmp.eq.s32.totalorder %v1016_v7, %v420_v5 }
 0x3b7   : > { %vm425_vm12 = vcmp.eq.s32.totalorder %v1019_v8, %v420_v5  ;;  %v426_v10 = vsel %vm422_vm9, -inf, %v384_v41  ;;  %v427_v11 = vsel %vm423_vm10, -inf, %v385_v42  ;;  %v428_v12 = vsel %vm424_vm11, -inf, %v386_v43 }
 0x3b8   : > { %v778_v13 = vsel %vm758_vm8, %v379_v6, %v421_v9  ;;  %v429_v14 = vsel %vm425_vm12, -inf, %v387_v44  ;;  %v430_v15 = vmax.f32 %v426_v10, %v427_v11 }
 0x3b9   : > { %v431_v16 = vmax.f32 %v428_v12, %v429_v14 }
 0x3bb   : > { %v432_v17 = vmax.f32 %v430_v15, %v431_v16 }
 0x3bd   : > { %433 = vmax.xlane.f32.xlu0 %v432_v17 }
 0x430   : > { %v1056_v18 = vpop.xlane.xlu0 %433 }
 0x431   : > { %vm435_vm13 = vcmp.eq.f32.partialorder %v426_v10, %v1056_v18  ;;  %vm436_vm14 = vcmp.eq.f32.partialorder %v427_v11, %v1056_v18  ;;  %vm437_vm15 = vcmp.eq.f32.partialorder %v428_v12, %v1056_v18  ;;  %vm438_vm0 = vcmp.eq.f32.partialorder %v429_v14, %v1056_v18 }
 0x432   : > { %v439_v19 = vsel %vm435_vm13, %v1003_v2, 512  ;;  %v440_v20 = vsel %vm436_vm14, %v1007_v3, 512  ;;  %v441_v21 = vsel %vm437_vm15, %v1016_v7, 512  ;;  %v442_v23 = vsel %vm438_vm0, %v1019_v8, 512 }
 0x433   : > { %vm443_vm1 = vcmp.lt.s32.totalorder %v439_v19, %v440_v20  ;;  %vm445_vm2 = vcmp.lt.s32.totalorder %v441_v21, %v442_v23 }
 0x434   : > { %v444_v24 = vsel %vm443_vm1, %v439_v19, %v440_v20  ;;  %v446_v25 = vsel %vm445_vm2, %v441_v21, %v442_v23 }
 0x435   : > { %vm447_vm3 = vcmp.lt.s32.totalorder %v444_v24, %v446_v25 }
 0x436   : > { %v448_v26 = vsel %vm447_vm3, %v444_v24, %v446_v25  ;;  %vm762_vm3 = vcmask 23552  }
 0x437   : > { %v450_v27 = vshra.s32 %v448_v26, 16  ;;  %v449_v29 = vand.u32 65535, %v448_v26 }
 0x439   : > { %v452_v28 = vcvt.s32.f32 %v450_v27  ;;  %v451_v31 = vcvt.s32.f32 %v449_v29 }
 0x43b   : > { %453 = vmin.xlane.f32.xlu1 %v452_v28 }
 0x4ae   : > { %v454_v30 = vpop.xlane.xlu1 %453 }
 0x4af   : > { %vm455_vm4 = vcmp.eq.f32.partialorder %v452_v28, %v454_v30  ;;  %v460_v33 = vcvt.f32.s32 %v454_v30 }
 0x4b0   : > { %v456_v32 = vsel %vm455_vm4, %v451_v31, inf }
 0x4b1   : > { %457 = vmin.xlane.f32.xlu2 %v456_v32  ;;  %v461_v35 = vshll.u32 %v460_v33, 16 }
 0x524   : > { %v458_v34 = vpop.xlane.xlu2 %457 }
 0x525   : > { %v459_v36 = vcvt.f32.s32 %v458_v34 }
 0x527   : > { %v462_v37 = vadd.s32 %v461_v35, %v459_v36 }
 0x529   : > { %v463_v38 = vadd.s32 %v462_v37, %v1009_v4  ;;  %vm464_vm6 = vcmp.eq.s32.totalorder %v1003_v2, %v462_v37  ;;  %vm465_vm7 = vcmp.eq.s32.totalorder %v1007_v3, %v462_v37  ;;  %vm466_vm9 = vcmp.eq.s32.totalorder %v1016_v7, %v462_v37 }
 0x52a   : > { %vm467_vm10 = vcmp.eq.s32.totalorder %v1019_v8, %v462_v37  ;;  %v468_v39 = vsel %vm464_vm6, -inf, %v426_v10  ;;  %v469_v40 = vsel %vm465_vm7, -inf, %v427_v11  ;;  %v470_v41 = vsel %vm466_vm9, -inf, %v428_v12 }
 0x52b   : > { %v779_v42 = vsel %vm760_vm5, %v778_v13, %v463_v38  ;;  %v471_v43 = vsel %vm467_vm10, -inf, %v429_v14  ;;  %v472_v44 = vmax.f32 %v468_v39, %v469_v40 }
 0x52c   : > { %v473_v45 = vmax.f32 %v470_v41, %v471_v43 }
 0x52e   : > { %v474_v46 = vmax.f32 %v472_v44, %v473_v45 }
 0x530   : > { %475 = vmax.xlane.f32.xlu0 %v474_v46 }
 0x5a3   : > { %v1072_v47 = vpop.xlane.xlu0 %475 }
 0x5a4   : > { %vm477_vm11 = vcmp.eq.f32.partialorder %v468_v39, %v1072_v47  ;;  %vm478_vm12 = vcmp.eq.f32.partialorder %v469_v40, %v1072_v47  ;;  %vm479_vm13 = vcmp.eq.f32.partialorder %v470_v41, %v1072_v47  ;;  %vm480_vm14 = vcmp.eq.f32.partialorder %v471_v43, %v1072_v47 }
 0x5a5   : > { %v481_v49 = vsel %vm477_vm11, %v1003_v2, 512  ;;  %v482_v50 = vsel %vm478_vm12, %v1007_v3, 512  ;;  %v483_v51 = vsel %vm479_vm13, %v1016_v7, 512  ;;  %v484_v52 = vsel %vm480_vm14, %v1019_v8, 512 }
 0x5a6   : > { %vm485_vm15 = vcmp.lt.s32.totalorder %v481_v49, %v482_v50  ;;  %vm487_vm0 = vcmp.lt.s32.totalorder %v483_v51, %v484_v52 }
 0x5a7   : > { %v486_v53 = vsel %vm485_vm15, %v481_v49, %v482_v50  ;;  %v488_v54 = vsel %vm487_vm0, %v483_v51, %v484_v52 }
 0x5a8   : > { %vm489_vm1 = vcmp.lt.s32.totalorder %v486_v53, %v488_v54 }
 0x5a9   : > { %v490_v55 = vsel %vm489_vm1, %v486_v53, %v488_v54 }
 0x5aa   : > { %v492_v56 = vshra.s32 %v490_v55, 16  ;;  %v491_v58 = vand.u32 65535, %v490_v55 }
 0x5ac   : > { %v494_v57 = vcvt.s32.f32 %v492_v56  ;;  %v493_v60 = vcvt.s32.f32 %v491_v58 }
 0x5ae   : > { %495 = vmin.xlane.f32.xlu1 %v494_v57 }
 0x621   : > { %v496_v59 = vpop.xlane.xlu1 %495 }
 0x622   : > { %vm497_vm2 = vcmp.eq.f32.partialorder %v494_v57, %v496_v59  ;;  %v502_v62 = vcvt.f32.s32 %v496_v59 }
 0x623   : > { %v498_v61 = vsel %vm497_vm2, %v493_v60, inf  ;;  %vm764_vm2 = vcmask 31744  }
 0x624   : > { %499 = vmin.xlane.f32.xlu2 %v498_v61  ;;  %v503_v0 = vshll.u32 %v502_v62, 16 }
 0x697   : > { %v500_v63 = vpop.xlane.xlu2 %499 }
 0x698   : > { %v501_v1 = vcvt.f32.s32 %v500_v63 }
 0x69a   : > { %v504_v5 = vadd.s32 %v503_v0, %v501_v1 }
 0x69c   : > { %v505_v6 = vadd.s32 %v504_v5, %v1009_v4  ;;  %vm506_vm4 = vcmp.eq.s32.totalorder %v1003_v2, %v504_v5  ;;  %vm507_vm6 = vcmp.eq.s32.totalorder %v1007_v3, %v504_v5  ;;  %vm508_vm7 = vcmp.eq.s32.totalorder %v1016_v7, %v504_v5 }
 0x69d   : > { %vm509_vm9 = vcmp.eq.s32.totalorder %v1019_v8, %v504_v5  ;;  %v510_v9 = vsel %vm506_vm4, -inf, %v468_v39  ;;  %v511_v10 = vsel %vm507_vm6, -inf, %v469_v40  ;;  %v512_v11 = vsel %vm508_vm7, -inf, %v470_v41 }
 0x69e   : > { %v780_v12 = vsel %vm762_vm3, %v779_v42, %v505_v6  ;;  %v513_v13 = vsel %vm509_vm9, -inf, %v471_v43  ;;  %v514_v14 = vmax.f32 %v510_v9, %v511_v10 }
 0x69f   : > { %v515_v15 = vmax.f32 %v512_v11, %v513_v13 }
 0x6a1   : > { %v516_v16 = vmax.f32 %v514_v14, %v515_v15 }
 0x6a3   : > { %517 = vmax.xlane.f32.xlu0 %v516_v16 }
 0x716   : > { %v1088_v17 = vpop.xlane.xlu0 %517 }
 0x717   : > { %vm519_vm10 = vcmp.eq.f32.partialorder %v510_v9, %v1088_v17  ;;  %vm520_vm11 = vcmp.eq.f32.partialorder %v511_v10, %v1088_v17  ;;  %vm521_vm12 = vcmp.eq.f32.partialorder %v512_v11, %v1088_v17  ;;  %vm522_vm13 = vcmp.eq.f32.partialorder %v513_v13, %v1088_v17 }
 0x718   : > { %v523_v19 = vsel %vm519_vm10, %v1003_v2, 512  ;;  %v524_v20 = vsel %vm520_vm11, %v1007_v3, 512  ;;  %v525_v21 = vsel %vm521_vm12, %v1016_v7, 512  ;;  %v526_v23 = vsel %vm522_vm13, %v1019_v8, 512 }
 0x719   : > { %vm527_vm14 = vcmp.lt.s32.totalorder %v523_v19, %v524_v20  ;;  %vm529_vm15 = vcmp.lt.s32.totalorder %v525_v21, %v526_v23 }
 0x71a   : > { %v528_v24 = vsel %vm527_vm14, %v523_v19, %v524_v20  ;;  %v530_v25 = vsel %vm529_vm15, %v525_v21, %v526_v23 }
 0x71b   : > { %vm531_vm0 = vcmp.lt.s32.totalorder %v528_v24, %v530_v25 }
 0x71c   : > { %v532_v26 = vsel %vm531_vm0, %v528_v24, %v530_v25 }
 0x71d   : > { %v534_v27 = vshra.s32 %v532_v26, 16  ;;  %v533_v29 = vand.u32 65535, %v532_v26 }
 0x71f   : > { %v536_v28 = vcvt.s32.f32 %v534_v27  ;;  %v535_v31 = vcvt.s32.f32 %v533_v29 }
 0x721   : > { %537 = vmin.xlane.f32.xlu1 %v536_v28 }
 0x794   : > { %v538_v30 = vpop.xlane.xlu1 %537 }
 0x795   : > { %vm539_vm1 = vcmp.eq.f32.partialorder %v536_v28, %v538_v30  ;;  %v544_v33 = vcvt.f32.s32 %v538_v30 }
 0x796   : > { %v540_v32 = vsel %vm539_vm1, %v535_v31, inf }
 0x797   : > { %541 = vmin.xlane.f32.xlu2 %v540_v32  ;;  %v545_v35 = vshll.u32 %v544_v33, 16 }
 0x80a   : > { %v542_v34 = vpop.xlane.xlu2 %541 }
 0x80b   : > { %v543_v36 = vcvt.f32.s32 %v542_v34 }
 0x80d   : > { %v546_v37 = vadd.s32 %v545_v35, %v543_v36 }
 0x80f   : > { %v547_v38 = vadd.s32 %v546_v37, %v1009_v4  ;;  %vm548_vm4 = vcmp.eq.s32.totalorder %v1003_v2, %v546_v37  ;;  %vm549_vm6 = vcmp.eq.s32.totalorder %v1007_v3, %v546_v37  ;;  %vm550_vm7 = vcmp.eq.s32.totalorder %v1016_v7, %v546_v37 }
 0x810   : > { %vm551_vm9 = vcmp.eq.s32.totalorder %v1019_v8, %v546_v37  ;;  %v552_v39 = vsel %vm548_vm4, -inf, %v510_v9  ;;  %v553_v40 = vsel %vm549_vm6, -inf, %v511_v10  ;;  %v554_v41 = vsel %vm550_vm7, -inf, %v512_v11 }
 0x811   : > { %v555_v42 = vsel %vm551_vm9, -inf, %v513_v13  ;;  %v556_v43 = vmax.f32 %v552_v39, %v553_v40  ;;  %v781_v44 = vsel %vm764_vm2, %v780_v12, %v547_v38  ;;  %vm766_vm4 = vcmask 39936  }
 0x812   : > { %v557_v45 = vmax.f32 %v554_v41, %v555_v42 }
 0x814   : > { %v558_v46 = vmax.f32 %v556_v43, %v557_v45 }
 0x816   : > { %559 = vmax.xlane.f32.xlu0 %v558_v46 }
 0x889   : > { %v1104_v49 = vpop.xlane.xlu0 %559 }
 0x88a   : > { %vm561_vm10 = vcmp.eq.f32.partialorder %v552_v39, %v1104_v49  ;;  %vm562_vm11 = vcmp.eq.f32.partialorder %v553_v40, %v1104_v49  ;;  %vm563_vm12 = vcmp.eq.f32.partialorder %v554_v41, %v1104_v49  ;;  %vm564_vm13 = vcmp.eq.f32.partialorder %v555_v42, %v1104_v49 }
 0x88b   : > { %v565_v50 = vsel %vm561_vm10, %v1003_v2, 512  ;;  %v566_v51 = vsel %vm562_vm11, %v1007_v3, 512  ;;  %v567_v52 = vsel %vm563_vm12, %v1016_v7, 512  ;;  %v568_v53 = vsel %vm564_vm13, %v1019_v8, 512 }
 0x88c   : > { %vm569_vm14 = vcmp.lt.s32.totalorder %v565_v50, %v566_v51  ;;  %vm571_vm15 = vcmp.lt.s32.totalorder %v567_v52, %v568_v53 }
 0x88d   : > { %v570_v54 = vsel %vm569_vm14, %v565_v50, %v566_v51  ;;  %v572_v55 = vsel %vm571_vm15, %v567_v52, %v568_v53 }
 0x88e   : > { %vm573_vm0 = vcmp.lt.s32.totalorder %v570_v54, %v572_v55 }
 0x88f   : > { %v574_v56 = vsel %vm573_vm0, %v570_v54, %v572_v55 }
 0x890   : > { %v576_v57 = vshra.s32 %v574_v56, 16  ;;  %v575_v59 = vand.u32 65535, %v574_v56 }
 0x892   : > { %v578_v58 = vcvt.s32.f32 %v576_v57  ;;  %v577_v61 = vcvt.s32.f32 %v575_v59 }
 0x894   : > { %579 = vmin.xlane.f32.xlu1 %v578_v58 }
 0x907   : > { %v580_v60 = vpop.xlane.xlu1 %579 }
 0x908   : > { %vm581_vm1 = vcmp.eq.f32.partialorder %v578_v58, %v580_v60  ;;  %v586_v63 = vcvt.f32.s32 %v580_v60 }
 0x909   : > { %v582_v62 = vsel %vm581_vm1, %v577_v61, inf }
 0x90a   : > { %583 = vmin.xlane.f32.xlu2 %v582_v62  ;;  %v587_v1 = vshll.u32 %v586_v63, 16 }
 0x97d   : > { %v584_v0 = vpop.xlane.xlu2 %583 }
 0x97e   : > { %v585_v5 = vcvt.f32.s32 %v584_v0 }
 0x980   : > { %v588_v6 = vadd.s32 %v587_v1, %v585_v5 }
 0x982   : > { %v589_v9 = vadd.s32 %v588_v6, %v1009_v4  ;;  %vm590_vm6 = vcmp.eq.s32.totalorder %v1003_v2, %v588_v6  ;;  %vm591_vm7 = vcmp.eq.s32.totalorder %v1007_v3, %v588_v6  ;;  %vm592_vm9 = vcmp.eq.s32.totalorder %v1016_v7, %v588_v6 }
 0x983   : > { %vm593_vm10 = vcmp.eq.s32.totalorder %v1019_v8, %v588_v6  ;;  %v594_v10 = vsel %vm590_vm6, -inf, %v552_v39  ;;  %v595_v11 = vsel %vm591_vm7, -inf, %v553_v40  ;;  %v596_v12 = vsel %vm592_vm9, -inf, %v554_v41 }
 0x984   : > { %v597_v13 = vsel %vm593_vm10, -inf, %v555_v42  ;;  %v598_v14 = vmax.f32 %v594_v10, %v595_v11  ;;  %v782_v15 = vsel %vm766_vm4, %v781_v44, %v589_v9  ;;  %vm768_vm7 = vcmask 48128  }
 0x985   : > { %v599_v16 = vmax.f32 %v596_v12, %v597_v13 }
 0x987   : > { %v600_v19 = vmax.f32 %v598_v14, %v599_v16 }
 0x989   : > { %601 = vmax.xlane.f32.xlu0 %v600_v19 }
 0x9fc   : > { %v1120_v20 = vpop.xlane.xlu0 %601 }
 0x9fd   : > { %vm603_vm11 = vcmp.eq.f32.partialorder %v594_v10, %v1120_v20  ;;  %vm604_vm12 = vcmp.eq.f32.partialorder %v595_v11, %v1120_v20  ;;  %vm605_vm13 = vcmp.eq.f32.partialorder %v596_v12, %v1120_v20  ;;  %vm606_vm14 = vcmp.eq.f32.partialorder %v597_v13, %v1120_v20 }
 0x9fe   : > { %v607_v21 = vsel %vm603_vm11, %v1003_v2, 512  ;;  %v608_v23 = vsel %vm604_vm12, %v1007_v3, 512  ;;  %v609_v24 = vsel %vm605_vm13, %v1016_v7, 512  ;;  %v610_v25 = vsel %vm606_vm14, %v1019_v8, 512 }
 0x9ff   : > { %vm611_vm15 = vcmp.lt.s32.totalorder %v607_v21, %v608_v23  ;;  %vm613_vm0 = vcmp.lt.s32.totalorder %v609_v24, %v610_v25 }
 0xa00   : > { %v612_v26 = vsel %vm611_vm15, %v607_v21, %v608_v23  ;;  %v614_v27 = vsel %vm613_vm0, %v609_v24, %v610_v25 }
 0xa01   : > { %vm615_vm1 = vcmp.lt.s32.totalorder %v612_v26, %v614_v27 }
 0xa02   : > { %v616_v28 = vsel %vm615_vm1, %v612_v26, %v614_v27 }
 0xa03   : > { %v618_v29 = vshra.s32 %v616_v28, 16  ;;  %v617_v31 = vand.u32 65535, %v616_v28 }
 0xa05   : > { %v620_v30 = vcvt.s32.f32 %v618_v29  ;;  %v619_v33 = vcvt.s32.f32 %v617_v31 }
 0xa07   : > { %621 = vmin.xlane.f32.xlu1 %v620_v30 }
 0xa7a   : > { %v622_v32 = vpop.xlane.xlu1 %621 }
 0xa7b   : > { %vm623_vm6 = vcmp.eq.f32.partialorder %v620_v30, %v622_v32  ;;  %v628_v35 = vcvt.f32.s32 %v622_v32 }
 0xa7c   : > { %v624_v34 = vsel %vm623_vm6, %v619_v33, inf }
 0xa7d   : > { %625 = vmin.xlane.f32.xlu2 %v624_v34  ;;  %v629_v37 = vshll.u32 %v628_v35, 16 }
 0xaf0   : > { %v626_v36 = vpop.xlane.xlu2 %625 }
 0xaf1   : > { %v627_v38 = vcvt.f32.s32 %v626_v36 }
 0xaf3   : > { %v630_v39 = vadd.s32 %v629_v37, %v627_v38 }
 0xaf5   : > { %v631_v40 = vadd.s32 %v630_v39, %v1009_v4  ;;  %vm632_vm9 = vcmp.eq.s32.totalorder %v1003_v2, %v630_v39  ;;  %vm633_vm10 = vcmp.eq.s32.totalorder %v1007_v3, %v630_v39  ;;  %vm634_vm11 = vcmp.eq.s32.totalorder %v1016_v7, %v630_v39 }
 0xaf6   : > { %vm635_vm12 = vcmp.eq.s32.totalorder %v1019_v8, %v630_v39  ;;  %v636_v41 = vsel %vm632_vm9, -inf, %v594_v10  ;;  %v637_v42 = vsel %vm633_vm10, -inf, %v595_v11  ;;  %v638_v43 = vsel %vm634_vm11, -inf, %v596_v12 }
 0xaf7   : > { %v639_v44 = vsel %vm635_vm12, -inf, %v597_v13  ;;  %v640_v45 = vmax.f32 %v636_v41, %v637_v42  ;;  %v783_v46 = vsel %vm768_vm7, %v782_v15, %v631_v40  ;;  %vm770_vm11 = vcmask 56320  }
 0xaf8   : > { %v641_v50 = vmax.f32 %v638_v43, %v639_v44 }
 0xafa   : > { %v642_v51 = vmax.f32 %v640_v45, %v641_v50 }
 0xafc   : > { %643 = vmax.xlane.f32.xlu0 %v642_v51 }
 0xb6f   : > { %v1136_v52 = vpop.xlane.xlu0 %643 }
 0xb70   : > { %vm645_vm13 = vcmp.eq.f32.partialorder %v636_v41, %v1136_v52  ;;  %vm646_vm14 = vcmp.eq.f32.partialorder %v637_v42, %v1136_v52  ;;  %vm647_vm15 = vcmp.eq.f32.partialorder %v638_v43, %v1136_v52  ;;  %vm648_vm0 = vcmp.eq.f32.partialorder %v639_v44, %v1136_v52 }
 0xb71   : > { %v649_v53 = vsel %vm645_vm13, %v1003_v2, 512  ;;  %v650_v54 = vsel %vm646_vm14, %v1007_v3, 512  ;;  %v651_v55 = vsel %vm647_vm15, %v1016_v7, 512  ;;  %v652_v56 = vsel %vm648_vm0, %v1019_v8, 512 }
 0xb72   : > { %vm653_vm1 = vcmp.lt.s32.totalorder %v649_v53, %v650_v54  ;;  %vm655_vm6 = vcmp.lt.s32.totalorder %v651_v55, %v652_v56 }
 0xb73   : > { %v654_v57 = vsel %vm653_vm1, %v649_v53, %v650_v54  ;;  %v656_v58 = vsel %vm655_vm6, %v651_v55, %v652_v56 }
 0xb74   : > { %vm657_vm9 = vcmp.lt.s32.totalorder %v654_v57, %v656_v58 }
 0xb75   : > { %v658_v59 = vsel %vm657_vm9, %v654_v57, %v656_v58  ;;  %v759_v57 = vsel %vm758_vm8, %v1025_v22, %v1039_v48  ;;  %vm774_vm8 = vcmask 72704  }
 0xb76   : > { %v660_v60 = vshra.s32 %v658_v59, 16  ;;  %v659_v62 = vand.u32 65535, %v658_v59  ;;  %v761_v58 = vsel %vm760_vm5, %v759_v57, %v1056_v18  ;;  %vm776_vm5 = vcmask 80896  }
 0xb77   : > { %v763_v59 = vsel %vm762_vm3, %v761_v58, %v1072_v47 }
 0xb78   : > { %v662_v61 = vcvt.s32.f32 %v660_v60  ;;  %v661_v0 = vcvt.s32.f32 %v659_v62  ;;  %v765_v60 = vsel %vm764_vm2, %v763_v59, %v1088_v17 }
 0xb7a   : > { %663 = vmin.xlane.f32.xlu1 %v662_v61 }
 0xbed   : > { %v664_v63 = vpop.xlane.xlu1 %663 }
 0xbee   : > { %vm665_vm10 = vcmp.eq.f32.partialorder %v662_v61, %v664_v63  ;;  %v670_v5 = vcvt.f32.s32 %v664_v63  ;;  %v767_v61 = vsel %vm766_vm4, %v765_v60, %v1104_v49 }
 0xbef   : > { %v666_v1 = vsel %vm665_vm10, %v661_v0, inf  ;;  %v769_v62 = vsel %vm768_vm7, %v767_v61, %v1120_v20 }
 0xbf0   : > { %667 = vmin.xlane.f32.xlu2 %v666_v1  ;;  %v671_v9 = vshll.u32 %v670_v5, 16  ;;  %v771_v22 = vsel %vm770_vm11, %v769_v62, %v1136_v52 }
 0xc63   : > { %v668_v6 = vpop.xlane.xlu2 %667 }
 0xc64   : > { %v669_v10 = vcvt.f32.s32 %v668_v6 }
 0xc66   : > { %v672_v11 = vadd.s32 %v671_v9, %v669_v10 }
 0xc68   : > { %v673_v12 = vadd.s32 %v672_v11, %v1009_v4  ;;  %vm674_vm12 = vcmp.eq.s32.totalorder %v1003_v2, %v672_v11  ;;  %vm675_vm13 = vcmp.eq.s32.totalorder %v1007_v3, %v672_v11  ;;  %vm676_vm14 = vcmp.eq.s32.totalorder %v1016_v7, %v672_v11 }
 0xc69   : > { %vm677_vm15 = vcmp.eq.s32.totalorder %v1019_v8, %v672_v11  ;;  %v678_v13 = vsel %vm674_vm12, -inf, %v636_v41  ;;  %v679_v14 = vsel %vm675_vm13, -inf, %v637_v42  ;;  %v680_v15 = vsel %vm676_vm14, -inf, %v638_v43 }
 0xc6a   : > { %v681_v16 = vsel %vm677_vm15, -inf, %v639_v44  ;;  %v682_v19 = vmax.f32 %v678_v13, %v679_v14  ;;  %v784_v21 = vsel %vm770_vm11, %v783_v46, %v673_v12 }
 0xc6b   : > { %v683_v23 = vmax.f32 %v680_v15, %v681_v16 }
 0xc6d   : > { %v684_v24 = vmax.f32 %v682_v19, %v683_v23 }
 0xc6f   : > { %685 = vmax.xlane.f32.xlu0 %v684_v24 }
 0xce2   : > { %v686_v25 = vpop.xlane.xlu0 %685 }
 0xce3   : > { %vm687_vm0 = vcmp.eq.f32.partialorder %v678_v13, %v686_v25  ;;  %vm688_vm1 = vcmp.eq.f32.partialorder %v679_v14, %v686_v25  ;;  %vm689_vm6 = vcmp.eq.f32.partialorder %v680_v15, %v686_v25  ;;  %vm690_vm9 = vcmp.eq.f32.partialorder %v681_v16, %v686_v25 }
 0xce4   : > { %v691_v26 = vsel %vm687_vm0, %v1003_v2, 512  ;;  %v692_v27 = vsel %vm688_vm1, %v1007_v3, 512  ;;  %v693_v28 = vsel %vm689_vm6, %v1016_v7, 512  ;;  %v694_v29 = vsel %vm690_vm9, %v1019_v8, 512 }
 0xce5   : > { %vm695_vm10 = vcmp.lt.s32.totalorder %v691_v26, %v692_v27  ;;  %vm697_vm12 = vcmp.lt.s32.totalorder %v693_v28, %v694_v29  ;;  %vm772_vm9 = vcmask 64512  }
 0xce6   : > { %v696_v30 = vsel %vm695_vm10, %v691_v26, %v692_v27  ;;  %v698_v31 = vsel %vm697_vm12, %v693_v28, %v694_v29  ;;  %v773_v48 = vsel %vm772_vm9, %v771_v22, %v686_v25 }
 0xce7   : > { %vm699_vm13 = vcmp.lt.s32.totalorder %v696_v30, %v698_v31 }
 0xce8   : > { %v700_v32 = vsel %vm699_vm13, %v696_v30, %v698_v31 }
 0xce9   : > { %v702_v33 = vshra.s32 %v700_v32, 16  ;;  %v701_v35 = vand.u32 65535, %v700_v32 }
 0xceb   : > { %v704_v34 = vcvt.s32.f32 %v702_v33  ;;  %v703_v37 = vcvt.s32.f32 %v701_v35 }
 0xced   : > { %705 = vmin.xlane.f32.xlu1 %v704_v34 }
 0xd60   : > { %v706_v36 = vpop.xlane.xlu1 %705 }
 0xd61   : > { %vm707_vm14 = vcmp.eq.f32.partialorder %v704_v34, %v706_v36  ;;  %v712_v39 = vcvt.f32.s32 %v706_v36 }
 0xd62   : > { %v708_v38 = vsel %vm707_vm14, %v703_v37, inf }
 0xd63   : > { %709 = vmin.xlane.f32.xlu2 %v708_v38  ;;  %v713_v41 = vshll.u32 %v712_v39, 16 }
 0xdd6   : > { %v710_v40 = vpop.xlane.xlu2 %709 }
 0xdd7   : > { %v711_v42 = vcvt.f32.s32 %v710_v40 }
 0xdd9   : > { %v714_v43 = vadd.s32 %v713_v41, %v711_v42 }
 0xddb   : > { %vm716_vm15 = vcmp.eq.s32.totalorder %v1003_v2, %v714_v43  ;;  %vm717_vm0 = vcmp.eq.s32.totalorder %v1007_v3, %v714_v43  ;;  %vm718_vm1 = vcmp.eq.s32.totalorder %v1016_v7, %v714_v43  ;;  %vm719_vm6 = vcmp.eq.s32.totalorder %v1019_v8, %v714_v43 }
 0xddc   : > { %v720_v44 = vsel %vm716_vm15, -inf, %v678_v13  ;;  %v721_v45 = vsel %vm717_vm0, -inf, %v679_v14  ;;  %v722_v46 = vsel %vm718_vm1, -inf, %v680_v15  ;;  %v723_v50 = vsel %vm719_vm6, -inf, %v681_v16 }
 0xddd   : > { %v724_v51 = vmax.f32 %v720_v44, %v721_v45  ;;  %v725_v53 = vmax.f32 %v722_v46, %v723_v50  ;;  %v715_v54 = vadd.s32 %v714_v43, %v1009_v4 }
 0xddf   : > { %v726_v55 = vmax.f32 %v724_v51, %v725_v53  ;;  %v785_v56 = vsel %vm772_vm9, %v784_v21, %v715_v54 }
 0xde1   : > { %727 = vmax.xlane.f32.xlu0 %v726_v55 }
 0xe54   : > { %v728_v18 = vpop.xlane.xlu0 %727 }
 0xe55   : > { %vm729_vm3 = vcmp.eq.f32.partialorder %v720_v44, %v728_v18  ;;  %vm730_vm2 = vcmp.eq.f32.partialorder %v721_v45, %v728_v18  ;;  %vm731_vm10 = vcmp.eq.f32.partialorder %v722_v46, %v728_v18  ;;  %vm732_vm4 = vcmp.eq.f32.partialorder %v723_v50, %v728_v18 }
 0xe56   : > { %v733_v47 = vsel %vm729_vm3, %v1003_v2, 512  ;;  %v734_v17 = vsel %vm730_vm2, %v1007_v3, 512  ;;  %v735_v49 = vsel %vm731_vm10, %v1016_v7, 512  ;;  %v736_v20 = vsel %vm732_vm4, %v1019_v8, 512 }
 0xe57   : > { %v775_v52 = vsel %vm774_vm8, %v773_v48, %v728_v18  ;;  %vm737_vm7 = vcmp.lt.s32.totalorder %v733_v47, %v734_v17  ;;  %vm739_vm11 = vcmp.lt.s32.totalorder %v735_v49, %v736_v20 }
 0xe58   : > { %777 = vst.msk [vmem:[%s177_s25] sm:$0xff] %vm776_vm5, %v775_v52  ;;  %v738_v63 = vsel %vm737_vm7, %v733_v47, %v734_v17  ;;  %v740_v0 = vsel %vm739_vm11, %v735_v49, %v736_v20 }
 0xe59   : > { %vm741_vm12 = vcmp.lt.s32.totalorder %v738_v63, %v740_v0 }
 0xe5a   : > { %v742_v1 = vsel %vm741_vm12, %v738_v63, %v740_v0 }
 0xe5b   : > { %v744_v5 = vshra.s32 %v742_v1, 16  ;;  %v743_v2 = vand.u32 65535, %v742_v1 }
 0xe5d   : > { %v746_v6 = vcvt.s32.f32 %v744_v5  ;;  %v745_v9 = vcvt.s32.f32 %v743_v2 }
 0xe5f   : > { %747 = vmin.xlane.f32.xlu1 %v746_v6 }
 0xed2   : > { %v748_v3 = vpop.xlane.xlu1 %747 }
 0xed3   : > { %vm749_vm13 = vcmp.eq.f32.partialorder %v746_v6, %v748_v3  ;;  %v754_v8 = vcvt.f32.s32 %v748_v3 }
 0xed4   : > { %v750_v7 = vsel %vm749_vm13, %v745_v9, inf }
 0xed5   : > { %751 = vmin.xlane.f32.xlu2 %v750_v7  ;;  %v755_v11 = vshll.u32 %v754_v8, 16 }
 0xf48   : > { %v752_v10 = vpop.xlane.xlu2 %751 }
 0xf49   : > { %v753_v12 = vcvt.f32.s32 %v752_v10 }
 0xf4b   : > { %v756_v13 = vadd.s32 %v755_v11, %v753_v12 }
 0xf4d   : > { %v757_v14 = vadd.s32 %v756_v13, %v1009_v4 }
 0xf4f   : > { %v786_v15 = vsel %vm774_vm8, %v785_v56, %v757_v14 }
 0xf50   : > { %787 = vst.msk [vmem:[%s181_s28] sm:$0xff] %vm776_vm5, %v786_v15 }
 0xf51 PF: > { %s14_s12 = sadd.s32 1, %s898_s12  }
 0xf52   : > { %p11_p5 = scmp.ge.s32.totalorder %s14_s12, 6  }
 0xf54   :  { %13 = sbr.rel (!%p11_p5) target bundleno = 1 (0x1), region = 70 }

</bundles_post_ra>
